<compile_context>
chip_gen: v7x
topology: tpu7x:2x2x1
jax: 0.10.0
libtpu: 0.0.40
codegen_flags: <defaults>
</compile_context>

<pallas_src>
import functools

import jax
import jax.numpy as jnp
from jax.experimental import pallas as pl
from jax.experimental.pallas import tpu as pltpu


# ----------------------------- Pallas kernels ------------------------------ #

def _convT_kernel(taps_ref, w_ref, out_ref, *, relu):
    """out(Cout, TM) = w(Cout, Ktot) @ taps(Ktot, TM), optional ReLU."""
    acc = jnp.dot(w_ref[...], taps_ref[...], preferred_element_type=jnp.float32)
    if relu:
        acc = jnp.maximum(acc, 0.0)
    out_ref[...] = acc.astype(out_ref.dtype)


def _convT_res_kernel(taps_ref, w_ref, rtaps_ref, ws_ref, out_ref, *, relu):
    """conv2 fused with the 1x1-conv shortcut: out = relu(w@taps + ws@rtaps)."""
    acc = jnp.dot(w_ref[...], taps_ref[...], preferred_element_type=jnp.float32)
    acc = acc + jnp.dot(ws_ref[...], rtaps_ref[...],
                        preferred_element_type=jnp.float32)
    if relu:
        acc = jnp.maximum(acc, 0.0)
    out_ref[...] = acc.astype(out_ref.dtype)


def _convT_idres_kernel(taps_ref, w_ref, res_ref, out_ref, *, relu):
    """conv2 fused with the identity shortcut: out = relu(w@taps + res)."""
    acc = jnp.dot(w_ref[...], taps_ref[...], preferred_element_type=jnp.float32)
    acc = acc + res_ref[...].astype(jnp.float32)
    if relu:
        acc = jnp.maximum(acc, 0.0)
    out_ref[...] = acc.astype(out_ref.dtype)


# ------------------------------ host-side glue ------------------------------ #

def _pack_w(w_oihw):
    """OIHW -> (Cout, Kh*Kw*Cin), matching the (ky, kx, cin) tap ordering."""
    cout, cin, kh, kw = w_oihw.shape
    return jnp.transpose(w_oihw, (0, 2, 3, 1)).reshape(cout, kh * kw * cin)


def _extract_taps_cm(x_cnhw, ksize, stride, padding):
    """x (C, N, H, W) -> channel-packed im2col taps (K*K*C, M), M = N*Ho*Wo."""
    c, n, h, w = x_cnhw.shape
    xp = jnp.pad(x_cnhw, ((0, 0), (0, 0),
                          (padding, padding), (padding, padding)))
    hp, wp = h + 2 * padding, w + 2 * padding
    ho = (hp - ksize) // stride + 1
    wo = (wp - ksize) // stride + 1
    m = n * ho * wo
    taps = []
    for ky in range(ksize):
        for kx in range(ksize):
            t = jax.lax.slice(
                xp,
                (0, 0, ky, kx),
                (c, n, ky + (ho - 1) * stride + 1, kx + (wo - 1) * stride + 1),
                (1, 1, stride, stride),
            )
            taps.append(t.reshape(c, m))
    return jnp.concatenate(taps, axis=0), (n, ho, wo)


def _pick_tm(m, bytes_per_col, budget_bytes=20 << 20):
    """Largest lane tile (multiple of 128) dividing m whose double-buffered
    pipelined working set fits the budget (conservative for v7x 64 MiB VMEM)."""
    candidates = [tm for tm in (1024, 512, 256, 128) if m % tm == 0]
    for tm in candidates:
        if 2 * tm * bytes_per_col <= budget_bytes:
            return tm
    return candidates[-1] if candidates else m


def _conv_cm_pallas(taps, w_packed, *, relu, out_dtype,
                    res_taps=None, ws_packed=None, res_identity=None):
    """One conv (optionally fused with shortcut + residual add) in channel-major
    layout: inputs/outputs are (rows, M) with M on the lane axis."""
    ktot, m = taps.shape
    cout = w_packed.shape[0]

    extra_rows = 0
    if res_taps is not None:
        extra_rows = res_taps.shape[0]
    elif res_identity is not None:
        extra_rows = res_identity.shape[0]

    bytes_per_col = 4 * (ktot + extra_rows + cout)  # f32, per lane column
    tm = _pick_tm(m, bytes_per_col)
    grid = (m // tm,)

    in_specs = [
        pl.BlockSpec((ktot, tm), lambda i: (0, i)),
        # Tiny invariant weight: whole array resident in VMEM, not pipelined.
        pl.BlockSpec(memory_space=pltpu.MemorySpace.VMEM),
    ]
    args = [taps, w_packed]

    if res_taps is not None:
        rrows = res_taps.shape[0]
        in_specs += [
            pl.BlockSpec((rrows, tm), lambda i: (0, i)),
            pl.BlockSpec(memory_space=pltpu.MemorySpace.VMEM),
        ]
        args += [res_taps, ws_packed]
        kernel = functools.partial(_convT_res_kernel, relu=relu)
    elif res_identity is not None:
        in_specs.append(pl.BlockSpec((cout, tm), lambda i: (0, i)))
        args.append(res_identity)
        kernel = functools.partial(_convT_idres_kernel, relu=relu)
    else:
        kernel = functools.partial(_convT_kernel, relu=relu)

    w_bytes = 4 * (w_packed.size
                   + (ws_packed.size if ws_packed is not None else 0))
    needed = 2 * tm * bytes_per_col + w_bytes + (4 << 20)
    vmem_limit = int(min(max(needed, 32 << 20), 48 << 20))

    return pl.pallas_call(
        kernel,
        out_shape=jax.ShapeDtypeStruct((cout, m), out_dtype),
        grid=grid,
        in_specs=in_specs,
        out_specs=pl.BlockSpec((cout, tm), lambda i: (0, i)),
        compiler_params=pltpu.CompilerParams(
            dimension_semantics=("parallel",),
            vmem_limit_bytes=vmem_limit),
    )(*args)


# ------------------------- BasicBlock_fake forward ------------------------- #

def basic_block_fake_forward(x_nchw, params, stride):
    """out = relu(conv2(relu(conv1(x))) + shortcut(x)), as the PyTorch module."""
    n, cin, h, w = x_nchw.shape
    planes = params["w1"].shape[0]
    x_cm = jnp.transpose(x_nchw, (1, 0, 2, 3))  # (Cin, N, H, W) channel-major

    # conv1: 3x3, stride=stride, pad=1, fused ReLU
    taps1, (_, ho, wo) = _extract_taps_cm(x_cm, 3, stride, 1)
    w1 = _pack_w(params["w1"])
    out1 = _conv_cm_pallas(taps1, w1, relu=True, out_dtype=x_nchw.dtype)
    out1_cm = out1.reshape(planes, n, ho, wo)

    # conv2: 3x3, stride=1, pad=1, fused with shortcut + residual add + ReLU
    taps2, _ = _extract_taps_cm(out1_cm, 3, 1, 1)
    w2 = _pack_w(params["w2"])
    if "ws" in params:
        rtaps, _ = _extract_taps_cm(x_cm, 1, stride, 0)     # (Cin, M)
        ws = _pack_w(params["ws"])                          # (Cout, Cin)
        out = _conv_cm_pallas(taps2, w2, relu=True, out_dtype=x_nchw.dtype,
                              res_taps=rtaps, ws_packed=ws)
    else:
        res = x_cm.reshape(cin, n * h * w)                  # identity shortcut
        out = _conv_cm_pallas(taps2, w2, relu=True, out_dtype=x_nchw.dtype,
                              res_identity=res)

    out = out.reshape(planes, n, ho, wo)
    return jnp.transpose(out, (1, 0, 2, 3))                 # -> NCHW


# ------------------------------- reference --------------------------------- #

def _ref_forward(x_nchw, params, stride):
    dn = ("NCHW", "OIHW", "NCHW")
    out = jax.lax.conv_general_dilated(x_nchw, params["w1"], (stride, stride),
                                       ((1, 1), (1, 1)), dimension_numbers=dn)
    out = jnp.maximum(out, 0.0)
    out = jax.lax.conv_general_dilated(out, params["w2"], (1, 1),
                                       ((1, 1), (1, 1)), dimension_numbers=dn)
    if "ws" in params:
        short = jax.lax.conv_general_dilated(x_nchw, params["ws"],
                                             (stride, stride),
                                             ((0, 0), (0, 0)),
                                             dimension_numbers=dn)
    else:
        short = x_nchw
    return jnp.maximum(out + short, 0.0)


# ---------------------------------- main ------------------------------------ #

if __name__ == "__main__":
    key = jax.random.PRNGKey(0)

    def make_params(in_planes, planes, stride):
        p = {"w1": jnp.full((planes, in_planes, 3, 3), 0.001, jnp.float32),
             "w2": jnp.full((planes, planes, 3, 3), 0.001, jnp.float32)}
        if stride != 1 or in_planes != planes:  # expansion == 1
            p["ws"] = jnp.full((planes, in_planes, 1, 1), 0.001, jnp.float32)
        return p

    # (N, in_planes, planes, H, W, stride): conv-shortcut, identity, strided.
    configs = [
        (2, 4, 8, 16, 16, 1),
        (2, 8, 8, 16, 16, 1),
        (2, 4, 8, 16, 16, 2),
    ]
    for idx, (N, cin, planes, H, W, stride) in enumerate(configs):
        sub = jax.random.fold_in(key, idx)
        x = jax.random.normal(sub, (N, cin, H, W), dtype=jnp.float32)
        params = make_params(cin, planes, stride)

        out = jax.block_until_ready(basic_block_fake_forward(x, params, stride))
        ref = _ref_forward(x, params, stride)

        assert out.shape == ref.shape == (N, planes, H // stride, W // stride)
        err = float(jnp.max(jnp.abs(out - ref)))
        assert jnp.allclose(out, ref, rtol=1e-4, atol=1e-5), err

    print("KERNEL_OK")
</pallas_src>

<mosaic_0001>
module attributes {stable_mosaic.version = 11 : i64} {
  func.func @_convT_kernel(%arg0: i32, %arg1: memref<36x512xf32, #tpu.memory_space<vmem>>, %arg2: memref<8x36xf32, #tpu.memory_space<vmem>>, %arg3: memref<8x512xf32, #tpu.memory_space<vmem>>) attributes {dimension_semantics = [#tpu.dimension_semantics<parallel>], iteration_bounds = array<i64: 1>, scalar_prefetch = 0 : i64, scratch_operands = 0 : i64, tpu.core_type = #tpu.core_type<tc>, window_params = [{transform_indices = @transform_0, window_bounds = array<i64: 36, 512>}, {pipeline_mode = #tpu.pipeline_mode<synchronous>, transform_indices = @transform_1, window_bounds = array<i64: 8, 36>}, {transform_indices = @transform_2, window_bounds = array<i64: 8, 512>}]} {
    %c0 = arith.constant 0 : index
    %c0_0 = arith.constant 0 : index
    %0 = vector.load %arg2[%c0, %c0_0] : memref<8x36xf32, #tpu.memory_space<vmem>>, vector<8x36xf32>
    %c0_1 = arith.constant 0 : index
    %c0_2 = arith.constant 0 : index
    %1 = vector.load %arg1[%c0_1, %c0_2] : memref<36x512xf32, #tpu.memory_space<vmem>>, vector<36x512xf32>
    %cst = arith.constant dense<0.000000e+00> : vector<8x512xf32>
    %2 = tpu.matmul %0, %1, %cst {dimension_numbers = #tpu.dot_dimension_numbers<[1], [0], [0], [1], [0, 0, 1, 1], [], []>} : vector<8x36xf32>, vector<36x512xf32>, vector<8x512xf32> -> vector<8x512xf32>
    %cst_3 = arith.constant 0.000000e+00 : f32
    %3 = vector.broadcast %cst_3 : f32 to vector<8x512xf32>
    %4 = arith.maximumf %2, %3 : vector<8x512xf32>
    %c0_4 = arith.constant 0 : index
    %c0_5 = arith.constant 0 : index
    %5 = vector.load %arg3[%c0_4, %c0_5] : memref<8x512xf32, #tpu.memory_space<vmem>>, vector<8x512xf32>
    tpu.vector_store %arg3[%c0_4, %c0_5], %4 {strides = array<i32>} : memref<8x512xf32, #tpu.memory_space<vmem>>, vector<8x512xf32>,
    return
  }
  func.func @transform_0(%arg0: i32) -> (i32, i32) {
    %c0_i32 = arith.constant 0 : i32
    %c0_i32_0 = arith.constant 0 : i32
    return %c0_i32, %arg0 : i32, i32
  }
  func.func @transform_1(%arg0: i32) -> (i32, i32) {
    %c0_i32 = arith.constant 0 : i32
    %c0_i32_0 = arith.constant 0 : i32
    %c0_i32_1 = arith.constant 0 : i32
    return %c0_i32, %c0_i32_0 : i32, i32
  }
  func.func @transform_2(%arg0: i32) -> (i32, i32) {
    %c0_i32 = arith.constant 0 : i32
    %c0_i32_0 = arith.constant 0 : i32
    return %c0_i32, %arg0 : i32, i32
  }
}

</mosaic_0001>

<bundles_post_ra>
// kernel: tpu_custom_call.1
= control target key start
LH: loop header
LB: loop body
LE: loop exit
PB: predicated region body
PF: predicated region fallthrough
CT: control target
= control target key end

     0   :  { %7 = vsyncpa [#allocation3], 0  ;;  %s399_s0 = inlined_call_operand.hbm [shape: f32[36,512], index: 0, kind: input, shape index: {}]   ;;  %s400_s1 = inlined_call_operand.hbm [shape: f32[8,36], index: 1, kind: input, shape index: {}]   ;;  %s401_s2 = inlined_call_operand.hbm [shape: f32[8,512], index: 2, kind: output, shape index: {}]  }
   0x1   :  { %8 = vsyncpa [#allocation6], 0 }
   0x2   :  { %9 = vsyncpa [#allocation4], 0  ;;  %s342_s9 = smov [#allocation2]   ;;  %s270_s13 = scalar_lea.hbm %s399_s0, 2560 }
   0x3   :  { %s15_s10 = sshll.u32 %s342_s9, 4  ;;  %p271_p0 = scmp.ne.s32.totalorder %s399_s0, %s270_s13  ;;  %s16_s10 = int_to_ptr.vmem [resolvable:$true] %s15_s10 }
   0x4   :  { %p274_p1 = scmp.lt.u32.totalorder %s270_s13, %s399_s0 }
   0x6   :  { %p276_p2 = pnand %p274_p1, %p271_p0 }
   0x8   :  { %279 = shalt.err (!%p276_p2)
}
   0x9   :  { %s280_s18 = scalar_lea.vmem %s16_s10, 2560  ;;  %p285_p4 = scmp.lt.s32.totalorder %s16_s10, %s16_s10 }
   0xa   :  { %p281_p3 = scmp.ne.s32.totalorder %s16_s10, %s280_s18  ;;  %p286_p5 = scmp.lt.s32.totalorder %s280_s18, %s280_s18 }
   0xc   :  { %p287_p6 = por %p286_p5, %p285_p4 }
   0xe   :  { %p288_p7 = pnand %p287_p6, %p281_p3 }
  0x10   :  { %291 = shalt.err (!%p288_p7)
}
  0x11   :  { %s343_s19 = smov 512   ;;  %s344_s20 = smov 32  }
  0x12   :  { %21 = dma.hbm_to_vmem [thread:$0]  %s399_s0, 2560, %s16_s10, [#allocation3], %s343_s19, %s343_s19, %s344_s20  }
  0x13   :  { %s345_s23 = smov [#allocation5]   ;;  %s292_s27 = scalar_lea.hbm %s400_s1, 128 }
  0x14   :  { %s28_s24 = sshll.u32 %s345_s23, 4  ;;  %p293_p8 = scmp.ne.s32.totalorder %s400_s1, %s292_s27  ;;  %s29_s24 = int_to_ptr.vmem [resolvable:$true] %s28_s24 }
  0x15   :  { %p296_p9 = scmp.lt.u32.totalorder %s292_s27, %s400_s1 }
  0x17   :  { %p298_p10 = pnand %p296_p9, %p293_p8 }
  0x19   :  { %301 = shalt.err (!%p298_p10)
}
  0x1a   :  { %s302_s4 = scalar_lea.vmem %s29_s24, 128  ;;  %p307_p12 = scmp.lt.s32.totalorder %s29_s24, %s29_s24 }
  0x1b   :  { %p303_p11 = scmp.ne.s32.totalorder %s29_s24, %s302_s4  ;;  %p308_p13 = scmp.lt.s32.totalorder %s302_s4, %s302_s4 }
  0x1d   :  { %p309_p0 = por %p308_p13, %p307_p12 }
  0x1f   :  { %p310_p1 = pnand %p309_p0, %p303_p11 }
  0x21   :  { %313 = shalt.err (!%p310_p1)
}
  0x22   :  { %31 = dma.hbm_to_vmem [thread:$0]  %s400_s1, 128, %s29_s24, [#allocation6]  }
  0x23   :  { %336 = dma.done.wait [#allocation3], 2560  }
  0x24   :  { %337 = vsyncadd [#allocation3], 4294964736 }
  0x25   :  { %338 = dma.done.wait [#allocation6], 128  }
  0x26   :  { %339 = vsyncadd [#allocation6], 4294967168  ;;  %v346_v0 = vmov 0.0   ;;  %v40_v1 = vld [vmem:[#allocation2 + $0x8] sm:$0xff]  ;;  %v42_v3 = vld [vmem:[#allocation2 + $0x18] sm:$0xff]  ;;  %vm63_vm0 = vcmask 1043456  }
  0x27   :  { %140 = vmatprep.mubr.f32.mxu0 %v346_v0  ;;  %211 = vmatprep.mubr.f32.mxu1 %v346_v0  ;;  %v44_v2 = vld [vmem:[#allocation2 + $0x28] sm:$0xff]  ;;  %v46_v5 = vld [vmem:[#allocation2 + $0x38] sm:$0xff]  ;;  %v39_v6 = vld [vmem:[#allocation2] sm:$0xff]  ;;  %vm59_vm1 = vcmask 293888   ;;  %s347_s1 = smov [#allocation7]  }
  0x28   :  { %v248_v4 = vpack.c.bf16 %v44_v2, %v40_v1  ;;  %v43_v7 = vld [vmem:[#allocation2 + $0x20] sm:$0xff]  ;;  %v256_v8 = vpack.c.bf16 %v46_v5, %v42_v3  ;;  %v41_v10 = vld [vmem:[#allocation2 + $0x10] sm:$0xff]  ;;  %v48_v12 = vld [vmem:[#allocation2 + $0x48] sm:$0xff]  ;;  %s232_s6 = sshll.u32 %s347_s1, 4  ;;  %s233_s6 = int_to_ptr.vmem [resolvable:$true] %s232_s6 }
  0x29   :  { %v250_v9 = vpack.c.bf16 %v43_v7, %v39_v6  ;;  %v45_v11 = vld [vmem:[#allocation2 + $0x30] sm:$0xff]  ;;  %v52_v14 = vld [vmem:[#allocation2 + $0x68] sm:$0xff]  ;;  %v50_v15 = vld [vmem:[#allocation2 + $0x58] sm:$0xff]  ;;  %s314_s7 = scalar_lea.vmem %s233_s6, 512  ;;  %p319_p3 = scmp.lt.s32.totalorder %s233_s6, %s233_s6 }
  0x2a   :  { %249 = vmatprep.subr.bf16.mxu0 %v248_v4  ;;  %v258_v13 = vpack.c.bf16 %v45_v11, %v41_v10  ;;  %v54_v16 = vld [vmem:[#allocation2 + $0x78] sm:$0xff]  ;;  %257 = vmatprep.subr.bf16.mxu1 %v256_v8  ;;  %v252_v17 = vpack.c.bf16 %v52_v14, %v48_v12  ;;  %v47_v19 = vld [vmem:[#allocation2 + $0x40] sm:$0xff]  ;;  %v49_v21 = vld [vmem:[#allocation2 + $0x50] sm:$0xff]  ;;  %p315_p2 = scmp.ne.s32.totalorder %s233_s6, %s314_s7  ;;  %p320_p4 = scmp.lt.s32.totalorder %s314_s7, %s314_s7 }
  0x2b   :  { %251 = vmatpush1.bf16.msra.mxu0 %v250_v9  ;;  %v260_v18 = vpack.c.bf16 %v54_v16, %v50_v15  ;;  %v51_v20 = vld [vmem:[#allocation2 + $0x60] sm:$0xff]  ;;  %v53_v23 = vld [vmem:[#allocation2 + $0x70] sm:$0xff]  ;;  %v56_v25 = vld [vmem:[#allocation2 + $0x88] sm:$0xf] }
  0x2c   :  { %259 = vmatpush1.bf16.msra.mxu1 %v258_v13  ;;  %v254_v22 = vpack.c.bf16 %v51_v20, %v47_v19  ;;  %253 = vmatprep.subr.bf16.mxu0 %v252_v17  ;;  %v262_v24 = vpack.c.bf16 %v53_v23, %v49_v21  ;;  %v58_v26 = vld [vmem:[#allocation2 + $0x98] sm:$0xf]  ;;  %v55_v27 = vld [vmem:[#allocation2 + $0x80] sm:$0xf]  ;;  %v57_v28 = vld [vmem:[#allocation2 + $0x90] sm:$0xf]  ;;  %p321_p5 = por %p320_p4, %p319_p3 }
  0x2d   :  { %261 = vmatprep.subr.bf16.mxu1 %v260_v18  ;;  %v38_v29 = vld [vmem:[#allocation5] sm:$0xff] }
  0x2e   :  { %p322_p6 = pnand %p321_p5, %p315_p2 }
  0x2f   :  { %255 = vmatpush1.bf16.msra.mxu0 %v254_v22 }
  0x30   :  { %263 = vmatpush1.bf16.msra.mxu1 %v262_v24  ;;  %242 = vmatprep.subr.msk.mxu0 %vm63_vm0, %v56_v25 }
  0x31   :  { %245 = vmatprep.subr.msk.mxu1 %vm63_vm0, %v58_v26 }
  0x33   :  { %243 = vmatpush1.msk.msra.mxu0 %vm63_vm0, %v55_v27 }
  0x34   :  { %246 = vmatpush1.msk.msra.mxu1 %vm63_vm0, %v57_v28  ;;  %244 = vmatmul.mubr.msk.f32.vlgmr.msra.gmra.mrb[0].mxu0 %vm59_vm1, %v38_v29 }
  0x35   :  { %247 = vmatmul.mubr.msk.f32.vlgmr.msra.gmra.mrb[0].mxu1 %vm59_vm1, %v38_v29 }
 0x107   :  { %v142_v30 = vpop.f32.mrb[0].mxu0 }
 0x108   :  { %v218_v31 = vmax.f32 %v142_v30, 0.0  ;;  %v213_v32 = vpop.f32.mrb[0].mxu1  ;;  %v144_v33 = vpop.f32.mrb[1].mxu0 }
 0x109   :  { %v220_v34 = vmax.f32 %v213_v32, 0.0  ;;  %v219_v35 = vmax.f32 %v144_v33, 0.0  ;;  %v215_v36 = vpop.f32.mrb[1].mxu1 }
 0x10a   :  { %222 = vst [vmem:[#allocation7] sm:$0xff] %v218_v31  ;;  %v221_v37 = vmax.f32 %v215_v36, 0.0 }
 0x10b   :  { %224 = vst [vmem:[#allocation7 + $0x10] sm:$0xff] %v220_v34  ;;  %223 = vst [vmem:[#allocation7 + $0x8] sm:$0xff] %v219_v35 }
 0x10c   :  { %225 = vst [vmem:[#allocation7 + $0x18] sm:$0xff] %v221_v37 }
 0x10d   :  { %325 = shalt.err (!%p322_p6)
}
 0x10e   :  { %s326_s10 = scalar_lea.hbm %s401_s2, 512 }
 0x10f   :  { %p327_p7 = scmp.ne.s32.totalorder %s401_s2, %s326_s10  ;;  %p330_p8 = scmp.lt.u32.totalorder %s326_s10, %s401_s2 }
 0x111   :  { %p332_p9 = pnand %p330_p8, %p327_p7 }
 0x113   :  { %335 = shalt.err (!%p332_p9)
}
 0x114   :  { %235 = dma.vmem_to_hbm [thread:$0]  %s233_s6, 512, %s401_s2, [#allocation4]  }
 0x115   :  { %340 = dma.done.wait [#allocation4], 512  }
 0x116   :  { %341 = vsyncadd [#allocation4], 4294966784 }
 0x117   :  { %239 = vsyncpa [#allocation3], 1 }
 0x118   :  { %240 = vsyncpa [#allocation6], 1 }
 0x119   :  { %241 = vsyncpa [#allocation4], 1 }

</bundles_post_ra>
